<compile_context>
chip_gen: v6e
topology: v6e:2x2x1
jax: 0.10.0
libtpu: 0.0.40
codegen_flags: <defaults>
</compile_context>

<pallas_src>
import functools

import jax
import jax.numpy as jnp
from jax.experimental import pallas as pl
from jax.experimental.pallas import tpu as pltpu

_LANE = 128
_SUBLANE = 8


def _round_up(x, m):
    return ((x + m - 1) // m) * m


def _pad_lanes(v, width):
    """Zero-pad the lane (last) dim of a 2-D value up to `width` (static shapes)."""
    pad = width - v.shape[1]
    if pad == 0:
        return v
    return jnp.concatenate([v, jnp.zeros((v.shape[0], pad), v.dtype)], axis=1)


def _stacked_ngru_kernel(inp_ref, h0_ref, wih_ref, whh_ref, gb_ref,
                         hout_ref, x_scr, *, hid_dim):
    """One grid step == one NormalizedGRUCell layer. x carried across layers in VMEM."""
    H = hid_dim
    layer = pl.program_id(0)

    # Layer 0: seed the VMEM carry with the (padded) external input.
    @pl.when(layer == 0)
    def _():
        x_scr[...] = inp_ref[...]

    x = x_scr[...]                       # (BP, DP) f32, carried across layers
    h = h0_ref[0]                        # (BP, HP) f32
    BP, DP = x.shape
    HP = h.shape[1]

    # Two MXU matmuls in the weight storage dtype (bf16 on the perf path), f32 accumulation.
    mm_dtype = wih_ref.dtype
    ih = jnp.dot(x.astype(mm_dtype), wih_ref[0],
                 preferred_element_type=jnp.float32)      # (BP, GP)
    hh = jnp.dot(h.astype(mm_dtype), whh_ref[0],
                 preferred_element_type=jnp.float32)      # (BP, GP)

    gb = gb_ref[0]                       # (4, GP) f32: gamma_ih, gamma_hh, bias_ih, bias_hh
    gih, ghh, bih, bhh = gb[0:1], gb[1:2], gb[2:3], gb[3:4]

    def ln_x(v, g, b):
        # NormalizedGRUCell._layer_norm_x: unbiased (ddof=1) std, eps = 0.
        # v is an exact-width slice (no padded lanes), so plain reductions are correct.
        width = v.shape[1]
        mean = jnp.mean(v, axis=1, keepdims=True)
        c = v - mean
        var = jnp.sum(c * c, axis=1, keepdims=True) / jnp.float32(width - 1)
        # Tiny clamp only so all-zero padded batch rows don't turn into NaN in the carry.
        inv_std = jax.lax.rsqrt(jnp.maximum(var, 1e-12))
        return g * (c * inv_std) + b

    def ln_h(v, g, b):
        # NormalizedGRUCell._layer_norm_h: mean-centering only.
        mean = jnp.mean(v, axis=1, keepdims=True)
        return g * (v - mean) + b

    # r, z gates: normalization over the concatenated 2H pre-activations.
    ih_rz = ln_x(ih[:, :2 * H], gih[:, :2 * H], bih[:, :2 * H])
    hh_rz = ln_h(hh[:, :2 * H], ghh[:, :2 * H], bhh[:, :2 * H])
    rz = jax.nn.sigmoid(ih_rz + hh_rz)
    r = rz[:, :H]
    z = rz[:, H:2 * H]

    # Candidate n: normalization over the H-wide pre-activations.
    ih_n = ln_x(ih[:, 2 * H:3 * H], gih[:, 2 * H:3 * H], bih[:, 2 * H:3 * H])
    hh_n = ln_h(hh[:, 2 * H:3 * H], ghh[:, 2 * H:3 * H], bhh[:, 2 * H:3 * H])
    n_gate = jnp.tanh(ih_n + r * hh_n)

    h_new = (1.0 - z) * n_gate + z * h[:, :H]            # (BP, H)

    # Zero-pad once to the carry width; slice back to HP for the lane-dense output store.
    h_new_dp = _pad_lanes(h_new, DP)                     # (BP, DP), zeros beyond H
    hout_ref[0] = h_new_dp[:, :HP]

    # Carry: next layer's input is this layer's hidden state (stays in VMEM).
    # The full-width rewrite guarantees columns >= H are exactly zero (no stale columns).
    @pl.when(layer + 1 < pl.num_programs(0))
    def _():
        x_scr[...] = h_new_dp


def pack_params(params, in_dim, hid_dim, weight_dtype=jnp.bfloat16):
    """One-time prep: transpose, contiguous 3H gate packing (lane-padded to GP), stack layers.

    Weights are stored in `weight_dtype` (bf16 by default: the kernel is weight-HBM-bound,
    so this halves the dominant traffic).  Padding is zeros, so padded matmul columns are
    exactly zero and padded gammas/biases keep them zero after the gate math.
    """
    L = len(params)
    H = hid_dim
    GP = _round_up(3 * H, _LANE)                  # contiguous 3H, one lane pad
    HP = _round_up(H, _LANE)
    DP = max(_round_up(in_dim, _LANE), HP)

    wih = jnp.zeros((L, DP, GP), weight_dtype)
    whh = jnp.zeros((L, HP, GP), weight_dtype)
    gb = jnp.zeros((L, 4, GP), jnp.float32)       # rows: gamma_ih, gamma_hh, bias_ih, bias_hh

    d = in_dim
    for l, p in enumerate(params):
        wih = wih.at[l, :d, :3 * H].set(jnp.transpose(p["w_ih"]).astype(weight_dtype))
        whh = whh.at[l, :H, :3 * H].set(jnp.transpose(p["w_hh"]).astype(weight_dtype))
        gb = gb.at[l, 0, :3 * H].set(p["gamma_ih"])
        gb = gb.at[l, 1, :3 * H].set(p["gamma_hh"])
        gb = gb.at[l, 2, :3 * H].set(p["bias_ih"])
        gb = gb.at[l, 3, :3 * H].set(p["bias_hh"])
        d = hid_dim
    return wih, whh, gb


@jax.jit
def stacked_normalized_gru(inp, hidden, packed):
    """Forward of StackedNormalizedGRU (eval mode).

    inp:    (batch, in_dim)
    hidden: (num_layers, batch, hid_dim)
    packed: output of pack_params()
    Returns (output (batch, hid_dim), h_n (num_layers, batch, hid_dim)).
    """
    # TODO(synk): inter-layer training-mode nn.Dropout is not applied (dropout=0 / eval).
    wih, whh, gb = packed
    L, DP, GP = wih.shape
    HP = whh.shape[1]
    B, in_dim = inp.shape
    H = hidden.shape[2]
    BP = _round_up(B, _SUBLANE)
    wbytes = jnp.dtype(wih.dtype).itemsize

    inp_p = jnp.zeros((BP, DP), jnp.float32).at[:B, :in_dim].set(inp.astype(jnp.float32))
    h0_p = jnp.zeros((L, BP, HP), jnp.float32).at[:, :B, :H].set(hidden.astype(jnp.float32))

    kernel = functools.partial(_stacked_ngru_kernel, hid_dim=H)

    # VMEM budget: double-buffered pipelined blocks + carry scratch + generous slack.
    blk_bytes = (BP * DP * 4              # inp block (f32)
                 + BP * HP * 4            # h0 block (f32)
                 + DP * GP * wbytes       # W_ih^T block
                 + HP * GP * wbytes       # W_hh^T block
                 + 4 * GP * 4             # gamma/bias block
                 + BP * HP * 4)           # output block
    vmem_limit = min(2 * blk_bytes + BP * DP * 4 + (8 << 20), 110 << 20)

    hout = pl.pallas_call(
        kernel,
        out_shape=jax.ShapeDtypeStruct((L, BP, HP), jnp.float32),
        grid_spec=pltpu.PrefetchScalarGridSpec(
            num_scalar_prefetch=0,
            grid=(L,),
            in_specs=[
                pl.BlockSpec((BP, DP), lambda l: (0, 0)),        # inp (only read at l==0)
                pl.BlockSpec((1, BP, HP), lambda l: (l, 0, 0)),  # h0 per layer
                pl.BlockSpec((1, DP, GP), lambda l: (l, 0, 0)),  # W_ih^T per layer
                pl.BlockSpec((1, HP, GP), lambda l: (l, 0, 0)),  # W_hh^T per layer
                pl.BlockSpec((1, 4, GP), lambda l: (l, 0, 0)),   # gamma/bias (packed)
            ],
            out_specs=pl.BlockSpec((1, BP, HP), lambda l: (l, 0, 0)),
            scratch_shapes=[pltpu.VMEM((BP, DP), jnp.float32)],  # inter-layer carry
        ),
        compiler_params=pltpu.CompilerParams(
            # Layer axis is a sequential carry -> must be "arbitrary".
            dimension_semantics=("arbitrary",),
            vmem_limit_bytes=int(vmem_limit),
        ),
    )(inp_p, h0_p, wih, whh, gb)

    h_n = hout[:, :B, :H]
    return h_n[-1], h_n


def _init_params(key, num_layers, in_dim, hid_dim):
    """Deterministic synthetic init mirroring nn.GRUCell shapes + gamma=ones."""
    params = []
    d = in_dim
    bound = 1.0 / jnp.sqrt(jnp.float32(hid_dim))
    for _ in range(num_layers):
        key, k1, k2, k3, k4 = jax.random.split(key, 5)
        params.append(dict(
            w_ih=jax.random.uniform(k1, (3 * hid_dim, d), jnp.float32, -bound, bound),
            w_hh=jax.random.uniform(k2, (3 * hid_dim, hid_dim), jnp.float32, -bound, bound),
            bias_ih=jax.random.uniform(k3, (3 * hid_dim,), jnp.float32, -bound, bound),
            bias_hh=jax.random.uniform(k4, (3 * hid_dim,), jnp.float32, -bound, bound),
            gamma_ih=jnp.ones((3 * hid_dim,), jnp.float32),
            gamma_hh=jnp.ones((3 * hid_dim,), jnp.float32),
        ))
        d = hid_dim
    return params


def _reference(inp, hidden, params, matmul_dtype=jnp.float32):
    """Pure-JAX reference of the PyTorch forward.

    matmul_dtype=bfloat16 reproduces the kernel's bf16 weight/activation MXU path
    (f32 accumulation, everything else in f32), for a tight apples-to-apples check.
    """
    md = matmul_dtype

    def ln_x(v, g, b):
        mean = jnp.mean(v, axis=1, keepdims=True)
        std = jnp.sqrt(jnp.sum((v - mean) ** 2, axis=1, keepdims=True) / (v.shape[1] - 1))
        return g[None, :] * ((v - mean) / std) + b[None, :]

    def ln_h(v, g, b):
        mean = jnp.mean(v, axis=1, keepdims=True)
        return g[None, :] * (v - mean) + b[None, :]

    x = inp
    outs = []
    for i, p in enumerate(params):
        h = hidden[i]
        H = h.shape[1]
        ih = jnp.dot(x.astype(md), p["w_ih"].T.astype(md),
                     preferred_element_type=jnp.float32)
        hh = jnp.dot(h.astype(md), p["w_hh"].T.astype(md),
                     preferred_element_type=jnp.float32)
        rz = jax.nn.sigmoid(
            ln_x(ih[:, :2 * H], p["gamma_ih"][:2 * H], p["bias_ih"][:2 * H])
            + ln_h(hh[:, :2 * H], p["gamma_hh"][:2 * H], p["bias_hh"][:2 * H]))
        r, z = rz[:, :H], rz[:, H:]
        n = jnp.tanh(
            ln_x(ih[:, 2 * H:], p["gamma_ih"][2 * H:], p["bias_ih"][2 * H:])
            + r * ln_h(hh[:, 2 * H:], p["gamma_hh"][2 * H:], p["bias_hh"][2 * H:]))
        hnew = (1 - z) * n + z * h
        outs.append(hnew)
        x = hnew
    return x, jnp.stack(outs)


if __name__ == "__main__":
    num_layers, in_dim, hid_dim, batch = 3, 16, 32, 4

    key = jax.random.PRNGKey(0)
    key, kx, kh, kp = jax.random.split(key, 4)
    inp = jax.random.normal(kx, (batch, in_dim), jnp.float32)
    hidden = jax.random.normal(kh, (num_layers, batch, hid_dim), jnp.float32)
    params = _init_params(kp, num_layers, in_dim, hid_dim)

    ref_out, ref_h = _reference(inp, hidden, params)                 # exact f32 module math

    # --- 1) f32 weight path: bit-faithful check against the module's f32 semantics ---
    packed_f32 = pack_params(params, in_dim, hid_dim, weight_dtype=jnp.float32)
    out32, h32 = stacked_normalized_gru(inp, hidden, packed_f32)
    out32 = jax.block_until_ready(out32)
    h32 = jax.block_until_ready(h32)
    assert out32.shape == (batch, hid_dim)
    assert h32.shape == (num_layers, batch, hid_dim)
    assert jnp.allclose(out32, ref_out, atol=1e-4, rtol=1e-4)
    assert jnp.allclose(h32, ref_h, atol=1e-4, rtol=1e-4)

    # --- 2) bf16 weight path (perf default): check against the bf16-matmul reference ---
    packed_bf16 = pack_params(params, in_dim, hid_dim)               # weight_dtype=bf16
    out16, h16 = stacked_normalized_gru(inp, hidden, packed_bf16)
    out16 = jax.block_until_ready(out16)
    h16 = jax.block_until_ready(h16)
    ref_out16, ref_h16 = _reference(inp, hidden, params, matmul_dtype=jnp.bfloat16)
    assert jnp.allclose(out16, ref_out16, atol=1e-2, rtol=1e-2)
    assert jnp.allclose(h16, ref_h16, atol=1e-2, rtol=1e-2)
    # Loose semantic sanity vs the f32 module (difference is bf16 weight storage only).
    assert jnp.allclose(out16, ref_out, atol=1e-1, rtol=1e-1)

    print("KERNEL_OK")
</pallas_src>

<mosaic_0001>
module attributes {stable_mosaic.version = 11 : i64} {
  func.func @_stacked_ngru_kernel(%arg0: i32, %arg1: memref<8x128xf32, #tpu.memory_space<vmem>>, %arg2: memref<1x8x128xf32, #tpu.memory_space<vmem>>, %arg3: memref<1x128x128xf32, #tpu.memory_space<vmem>>, %arg4: memref<1x128x128xf32, #tpu.memory_space<vmem>>, %arg5: memref<1x4x128xf32, #tpu.memory_space<vmem>>, %arg6: memref<1x8x128xf32, #tpu.memory_space<vmem>>, %arg7: memref<8x128xf32, #tpu.memory_space<vmem>>) attributes {dimension_semantics = [#tpu.dimension_semantics<arbitrary>], iteration_bounds = array<i64: 3>, scalar_prefetch = 0 : i64, scratch_operands = 1 : i64, tpu.core_type = #tpu.core_type<tc>, window_params = [{pipeline_mode = #tpu.pipeline_mode<synchronous>, transform_indices = @transform_0, window_bounds = array<i64: 8, 128>}, {transform_indices = @transform_1, window_bounds = array<i64: 1, 8, 128>}, {transform_indices = @transform_2, window_bounds = array<i64: 1, 128, 128>}, {transform_indices = @transform_3, window_bounds = array<i64: 1, 128, 128>}, {transform_indices = @transform_4, window_bounds = array<i64: 1, 4, 128>}, {transform_indices = @transform_5, window_bounds = array<i64: 1, 8, 128>}]} {
    %c0_i32 = arith.constant 0 : i32
    %0 = arith.cmpi eq, %arg0, %c0_i32 : i32
    %1 = arith.extui %0 : i1 to i32
    %c0_i32_0 = arith.constant 0 : i32
    %2 = arith.cmpi ne, %1, %c0_i32_0 : i32
    scf.if %2 {
      %c0_36 = arith.constant 0 : index
      %c0_37 = arith.constant 0 : index
      %116 = vector.load %arg1[%c0_36, %c0_37] : memref<8x128xf32, #tpu.memory_space<vmem>>, vector<8x128xf32>
      %c0_38 = arith.constant 0 : index
      %c0_39 = arith.constant 0 : index
      %117 = vector.load %arg7[%c0_38, %c0_39] : memref<8x128xf32, #tpu.memory_space<vmem>>, vector<8x128xf32>
      tpu.vector_store %arg7[%c0_38, %c0_39], %116 {strides = array<i32>} : memref<8x128xf32, #tpu.memory_space<vmem>>, vector<8x128xf32>,
    } else {
    }
    %c0 = arith.constant 0 : index
    %c0_1 = arith.constant 0 : index
    %3 = vector.load %arg7[%c0, %c0_1] : memref<8x128xf32, #tpu.memory_space<vmem>>, vector<8x128xf32>
    %c0_2 = arith.constant 0 : index
    %c0_3 = arith.constant 0 : index
    %c0_4 = arith.constant 0 : index
    %4 = vector.load %arg2[%c0_2, %c0_3, %c0_4] : memref<1x8x128xf32, #tpu.memory_space<vmem>>, vector<1x8x128xf32>
    %5 = vector.shape_cast %4 : vector<1x8x128xf32> to vector<8x128xf32>
    %c0_5 = arith.constant 0 : index
    %c0_6 = arith.constant 0 : index
    %c0_7 = arith.constant 0 : index
    %6 = vector.load %arg3[%c0_5, %c0_6, %c0_7] : memref<1x128x128xf32, #tpu.memory_space<vmem>>, vector<1x128x128xf32>
    %7 = vector.shape_cast %6 : vector<1x128x128xf32> to vector<128x128xf32>
    %cst = arith.constant dense<0.000000e+00> : vector<8x128xf32>
    %8 = tpu.matmul %3, %7, %cst {dimension_numbers = #tpu.dot_dimension_numbers<[1], [0], [0], [1], [0, 0, 1, 1], [], []>} : vector<8x128xf32>, vector<128x128xf32>, vector<8x128xf32> -> vector<8x128xf32>
    %c0_8 = arith.constant 0 : index
    %c0_9 = arith.constant 0 : index
    %c0_10 = arith.constant 0 : index
    %9 = vector.load %arg4[%c0_8, %c0_9, %c0_10] : memref<1x128x128xf32, #tpu.memory_space<vmem>>, vector<1x128x128xf32>
    %10 = vector.shape_cast %9 : vector<1x128x128xf32> to vector<128x128xf32>
    %cst_11 = arith.constant dense<0.000000e+00> : vector<8x128xf32>
    %11 = tpu.matmul %5, %10, %cst_11 {dimension_numbers = #tpu.dot_dimension_numbers<[1], [0], [0], [1], [0, 0, 1, 1], [], []>} : vector<8x128xf32>, vector<128x128xf32>, vector<8x128xf32> -> vector<8x128xf32>
    %c0_12 = arith.constant 0 : index
    %c0_13 = arith.constant 0 : index
    %c0_14 = arith.constant 0 : index
    %12 = vector.load %arg5[%c0_12, %c0_13, %c0_14] : memref<1x4x128xf32, #tpu.memory_space<vmem>>, vector<1x4x128xf32>
    %13 = vector.shape_cast %12 : vector<1x4x128xf32> to vector<4x128xf32>
    %14 = vector.extract_strided_slice %13 {offsets = [0, 0], sizes = [1, 128], strides = [1, 1]} : vector<4x128xf32> to vector<1x128xf32>
    %15 = vector.extract_strided_slice %13 {offsets = [1, 0], sizes = [1, 128], strides = [1, 1]} : vector<4x128xf32> to vector<1x128xf32>
    %16 = vector.extract_strided_slice %13 {offsets = [2, 0], sizes = [1, 128], strides = [1, 1]} : vector<4x128xf32> to vector<1x128xf32>
    %17 = vector.extract_strided_slice %13 {offsets = [3, 0], sizes = [1, 128], strides = [1, 1]} : vector<4x128xf32> to vector<1x128xf32>
    %18 = vector.extract_strided_slice %8 {offsets = [0, 0], sizes = [8, 64], strides = [1, 1]} : vector<8x128xf32> to vector<8x64xf32>
    %19 = vector.extract_strided_slice %14 {offsets = [0, 0], sizes = [1, 64], strides = [1, 1]} : vector<1x128xf32> to vector<1x64xf32>
    %20 = vector.extract_strided_slice %16 {offsets = [0, 0], sizes = [1, 64], strides = [1, 1]} : vector<1x128xf32> to vector<1x64xf32>
    %cst_15 = arith.constant dense<0.000000e+00> : vector<8xf32>
    %21 = vector.multi_reduction <add>, %18, %cst_15 [1] : vector<8x64xf32> to vector<8xf32>
    %22 = vector.shape_cast %21 : vector<8xf32> to vector<8x1xf32>
    %cst_16 = arith.constant 6.400000e+01 : f32
    %23 = vector.broadcast %cst_16 : f32 to vector<8x1xf32>
    %24 = arith.divf %22, %23 : vector<8x1xf32>
    %25 = vector.broadcast %24 : vector<8x1xf32> to vector<8x64xf32>
    %26 = arith.subf %18, %25 : vector<8x64xf32>
    %27 = arith.mulf %26, %26 : vector<8x64xf32>
    %cst_17 = arith.constant dense<0.000000e+00> : vector<8xf32>
    %28 = vector.multi_reduction <add>, %27, %cst_17 [1] : vector<8x64xf32> to vector<8xf32>
    %29 = vector.shape_cast %28 : vector<8xf32> to vector<8x1xf32>
    %cst_18 = arith.constant 6.300000e+01 : f32
    %30 = vector.broadcast %cst_18 : f32 to vector<8x1xf32>
    %31 = arith.divf %29, %30 : vector<8x1xf32>
    %cst_19 = arith.constant 9.99999996E-13 : f32
    %32 = vector.broadcast %cst_19 : f32 to vector<8x1xf32>
    %33 = arith.maximumf %31, %32 : vector<8x1xf32>
    %34 = math.rsqrt %33 : vector<8x1xf32>
    %35 = vector.broadcast %34 : vector<8x1xf32> to vector<8x64xf32>
    %36 = arith.mulf %26, %35 : vector<8x64xf32>
    %37 = vector.broadcast %19 : vector<1x64xf32> to vector<8x64xf32>
    %38 = arith.mulf %37, %36 : vector<8x64xf32>
    %39 = vector.broadcast %20 : vector<1x64xf32> to vector<8x64xf32>
    %40 = arith.addf %38, %39 : vector<8x64xf32>
    %41 = vector.extract_strided_slice %11 {offsets = [0, 0], sizes = [8, 64], strides = [1, 1]} : vector<8x128xf32> to vector<8x64xf32>
    %42 = vector.extract_strided_slice %15 {offsets = [0, 0], sizes = [1, 64], strides = [1, 1]} : vector<1x128xf32> to vector<1x64xf32>
    %43 = vector.extract_strided_slice %17 {offsets = [0, 0], sizes = [1, 64], strides = [1, 1]} : vector<1x128xf32> to vector<1x64xf32>
    %cst_20 = arith.constant dense<0.000000e+00> : vector<8xf32>
    %44 = vector.multi_reduction <add>, %41, %cst_20 [1] : vector<8x64xf32> to vector<8xf32>
    %45 = vector.shape_cast %44 : vector<8xf32> to vector<8x1xf32>
    %cst_21 = arith.constant 6.400000e+01 : f32
    %46 = vector.broadcast %cst_21 : f32 to vector<8x1xf32>
    %47 = arith.divf %45, %46 : vector<8x1xf32>
    %48 = vector.broadcast %47 : vector<8x1xf32> to vector<8x64xf32>
    %49 = arith.subf %41, %48 : vector<8x64xf32>
    %50 = vector.broadcast %42 : vector<1x64xf32> to vector<8x64xf32>
    %51 = arith.mulf %50, %49 : vector<8x64xf32>
    %52 = vector.broadcast %43 : vector<1x64xf32> to vector<8x64xf32>
    %53 = arith.addf %51, %52 : vector<8x64xf32>
    %54 = arith.addf %40, %53 : vector<8x64xf32>
    %55 = arith.negf %54 : vector<8x64xf32>
    %56 = math.exp %55 : vector<8x64xf32>
    %cst_22 = arith.constant 1.000000e+00 : f32
    %57 = vector.broadcast %cst_22 : f32 to vector<8x64xf32>
    %58 = arith.addf %57, %56 : vector<8x64xf32>
    %59 = arith.divf %57, %58 : vector<8x64xf32>
    %60 = vector.extract_strided_slice %59 {offsets = [0, 0], sizes = [8, 32], strides = [1, 1]} : vector<8x64xf32> to vector<8x32xf32>
    %61 = vector.extract_strided_slice %59 {offsets = [0, 32], sizes = [8, 32], strides = [1, 1]} : vector<8x64xf32> to vector<8x32xf32>
    %62 = vector.extract_strided_slice %8 {offsets = [0, 64], sizes = [8, 32], strides = [1, 1]} : vector<8x128xf32> to vector<8x32xf32>
    %63 = vector.extract_strided_slice %14 {offsets = [0, 64], sizes = [1, 32], strides = [1, 1]} : vector<1x128xf32> to vector<1x32xf32>
    %64 = vector.extract_strided_slice %16 {offsets = [0, 64], sizes = [1, 32], strides = [1, 1]} : vector<1x128xf32> to vector<1x32xf32>
    %cst_23 = arith.constant dense<0.000000e+00> : vector<8xf32>
    %65 = vector.multi_reduction <add>, %62, %cst_23 [1] : vector<8x32xf32> to vector<8xf32>
    %66 = vector.shape_cast %65 : vector<8xf32> to vector<8x1xf32>
    %cst_24 = arith.constant 3.200000e+01 : f32
    %67 = vector.broadcast %cst_24 : f32 to vector<8x1xf32>
    %68 = arith.divf %66, %67 : vector<8x1xf32>
    %69 = vector.broadcast %68 : vector<8x1xf32> to vector<8x32xf32>
    %70 = arith.subf %62, %69 : vector<8x32xf32>
    %71 = arith.mulf %70, %70 : vector<8x32xf32>
    %cst_25 = arith.constant dense<0.000000e+00> : vector<8xf32>
    %72 = vector.multi_reduction <add>, %71, %cst_25 [1] : vector<8x32xf32> to vector<8xf32>
    %73 = vector.shape_cast %72 : vector<8xf32> to vector<8x1xf32>
    %cst_26 = arith.constant 3.100000e+01 : f32
    %74 = vector.broadcast %cst_26 : f32 to vector<8x1xf32>
    %75 = arith.divf %73, %74 : vector<8x1xf32>
    %cst_27 = arith.constant 9.99999996E-13 : f32
    %76 = vector.broadcast %cst_27 : f32 to vector<8x1xf32>
    %77 = arith.maximumf %75, %76 : vector<8x1xf32>
    %78 = math.rsqrt %77 : vector<8x1xf32>
    %79 = vector.broadcast %78 : vector<8x1xf32> to vector<8x32xf32>
    %80 = arith.mulf %70, %79 : vector<8x32xf32>
    %81 = vector.broadcast %63 : vector<1x32xf32> to vector<8x32xf32>
    %82 = arith.mulf %81, %80 : vector<8x32xf32>
    %83 = vector.broadcast %64 : vector<1x32xf32> to vector<8x32xf32>
    %84 = arith.addf %82, %83 : vector<8x32xf32>
    %85 = vector.extract_strided_slice %11 {offsets = [0, 64], sizes = [8, 32], strides = [1, 1]} : vector<8x128xf32> to vector<8x32xf32>
    %86 = vector.extract_strided_slice %15 {offsets = [0, 64], sizes = [1, 32], strides = [1, 1]} : vector<1x128xf32> to vector<1x32xf32>
    %87 = vector.extract_strided_slice %17 {offsets = [0, 64], sizes = [1, 32], strides = [1, 1]} : vector<1x128xf32> to vector<1x32xf32>
    %cst_28 = arith.constant dense<0.000000e+00> : vector<8xf32>
    %88 = vector.multi_reduction <add>, %85, %cst_28 [1] : vector<8x32xf32> to vector<8xf32>
    %89 = vector.shape_cast %88 : vector<8xf32> to vector<8x1xf32>
    %cst_29 = arith.constant 3.200000e+01 : f32
    %90 = vector.broadcast %cst_29 : f32 to vector<8x1xf32>
    %91 = arith.divf %89, %90 : vector<8x1xf32>
    %92 = vector.broadcast %91 : vector<8x1xf32> to vector<8x32xf32>
    %93 = arith.subf %85, %92 : vector<8x32xf32>
    %94 = vector.broadcast %86 : vector<1x32xf32> to vector<8x32xf32>
    %95 = arith.mulf %94, %93 : vector<8x32xf32>
    %96 = vector.broadcast %87 : vector<1x32xf32> to vector<8x32xf32>
    %97 = arith.addf %95, %96 : vector<8x32xf32>
    %98 = arith.mulf %60, %97 : vector<8x32xf32>
    %99 = arith.addf %84, %98 : vector<8x32xf32>
    %100 = math.tanh %99 : vector<8x32xf32>
    %cst_30 = arith.constant 1.000000e+00 : f32
    %101 = vector.broadcast %cst_30 : f32 to vector<8x32xf32>
    %102 = arith.subf %101, %61 : vector<8x32xf32>
    %103 = arith.mulf %102, %100 : vector<8x32xf32>
    %104 = vector.extract_strided_slice %5 {offsets = [0, 0], sizes = [8, 32], strides = [1, 1]} : vector<8x128xf32> to vector<8x32xf32>
    %105 = arith.mulf %61, %104 : vector<8x32xf32>
    %106 = arith.addf %103, %105 : vector<8x32xf32>
    %cst_31 = arith.constant 0.000000e+00 : f32
    %107 = vector.broadcast %cst_31 : f32 to vector<8x96xf32>
    %108 = tpu.concatenate %106, %107 in 1 : vector<8x32xf32>, vector<8x96xf32> -> vector<8x128xf32>
    %c0_32 = arith.constant 0 : index
    %c0_33 = arith.constant 0 : index
    %c0_34 = arith.constant 0 : index
    %109 = vector.load %arg6[%c0_32, %c0_33, %c0_34] : memref<1x8x128xf32, #tpu.memory_space<vmem>>, vector<1x8x128xf32>
    %110 = vector.shape_cast %109 : vector<1x8x128xf32> to vector<8x128xf32>
    %111 = vector.shape_cast %108 : vector<8x128xf32> to vector<1x8x128xf32>
    tpu.vector_store %arg6[%c0_32, %c0_33, %c0_34], %111 {strides = array<i32>} : memref<1x8x128xf32, #tpu.memory_space<vmem>>, vector<1x8x128xf32>,
    %c1_i32 = arith.constant 1 : i32
    %112 = arith.addi %arg0, %c1_i32 : i32
    %c3_i32 = arith.constant 3 : i32
    %113 = arith.cmpi slt, %112, %c3_i32 : i32
    %114 = arith.extui %113 : i1 to i32
    %c0_i32_35 = arith.constant 0 : i32
    %115 = arith.cmpi ne, %114, %c0_i32_35 : i32
    scf.if %115 {
      %c0_36 = arith.constant 0 : index
      %c0_37 = arith.constant 0 : index
      %116 = vector.load %arg7[%c0_36, %c0_37] : memref<8x128xf32, #tpu.memory_space<vmem>>, vector<8x128xf32>
      tpu.vector_store %arg7[%c0_36, %c0_37], %108 {strides = array<i32>} : memref<8x128xf32, #tpu.memory_space<vmem>>, vector<8x128xf32>,
    } else {
    }
    return
  }
  func.func @transform_0(%arg0: i32) -> (i32, i32) {
    %c0_i32 = arith.constant 0 : i32
    %c0_i32_0 = arith.constant 0 : i32
    %c0_i32_1 = arith.constant 0 : i32
    return %c0_i32, %c0_i32_0 : i32, i32
  }
  func.func @transform_1(%arg0: i32) -> (i32, i32, i32) {
    %c0_i32 = arith.constant 0 : i32
    %c0_i32_0 = arith.constant 0 : i32
    %c0_i32_1 = arith.constant 0 : i32
    return %arg0, %c0_i32, %c0_i32_0 : i32, i32, i32
  }
  func.func @transform_2(%arg0: i32) -> (i32, i32, i32) {
    %c0_i32 = arith.constant 0 : i32
    %c0_i32_0 = arith.constant 0 : i32
    %c0_i32_1 = arith.constant 0 : i32
    return %arg0, %c0_i32, %c0_i32_0 : i32, i32, i32
  }
  func.func @transform_3(%arg0: i32) -> (i32, i32, i32) {
    %c0_i32 = arith.constant 0 : i32
    %c0_i32_0 = arith.constant 0 : i32
    %c0_i32_1 = arith.constant 0 : i32
    return %arg0, %c0_i32, %c0_i32_0 : i32, i32, i32
  }
  func.func @transform_4(%arg0: i32) -> (i32, i32, i32) {
    %c0_i32 = arith.constant 0 : i32
    %c0_i32_0 = arith.constant 0 : i32
    %c0_i32_1 = arith.constant 0 : i32
    return %arg0, %c0_i32, %c0_i32_0 : i32, i32, i32
  }
  func.func @transform_5(%arg0: i32) -> (i32, i32, i32) {
    %c0_i32 = arith.constant 0 : i32
    %c0_i32_0 = arith.constant 0 : i32
    %c0_i32_1 = arith.constant 0 : i32
    return %arg0, %c0_i32, %c0_i32_0 : i32, i32, i32
  }
}

</mosaic_0001>

<bundles_post_ra>
// kernel: stacked_normalized_gru.1
= control target key start
LH: loop header
LB: loop body
LE: loop exit
PB: predicated region body
PF: predicated region fallthrough
CT: control target
= control target key end

     0   :  { %10 = vsyncpa [#allocation4], 0  ;;  %s1322_s0 = inlined_call_operand.vmem [shape: f32[8,128], index: 0, kind: input, shape index: {}]   ;;  %s1323_s1 = inlined_call_operand.vmem [shape: f32[3,8,128], index: 1, kind: input, shape index: {}]   ;;  %s1324_s2 = inlined_call_operand.hbm [shape: f32[3,128,128], index: 2, kind: input, shape index: {}]   ;;  %s1325_s3 = inlined_call_operand.hbm [shape: f32[3,128,128], index: 3, kind: input, shape index: {}]   ;;  %s1326_s4 = inlined_call_operand.vmem [shape: f32[3,4,128], index: 4, kind: input, shape index: {}]   ;;  %s1327_s5 = inlined_call_operand.vmem [shape: f32[3,8,128], index: 5, kind: output, shape index: {}]  }
   0x1   :  { %12 = vsyncpa [#allocation4 + $0x1], 0 }
   0x2   :  { %13 = vsyncpa [#allocation6], 0 }
   0x3   :  { %15 = vsyncpa [#allocation6 + $0x1], 0  ;;  %s1052_s18 = smov 0   ;;  %s1054_s19 = smov 0  }
   0x4   :  { %s1056_s20 = smov 0   ;;  %s1058_s21 = smov 0  }
   0x5 LB: > { %s1071_s22 = sadd.s32 4294967295, %s1011_s21   ;;  %s1074_s23 = sadd.s32 1, %s1011_s21   ;;  %s1011_s21 = sphi %s1058_s21, %s1337_s21   ;;  %s1007_s20 = sphi %s1056_s20, %s1336_s20   ;;  %s1003_s19 = sphi %s1054_s19, %s1335_s19   ;;  %s999_s18 = sphi %s1052_s18, %s1334_s18  }
   0x6   : > { %s72_s24 = ssub.s32 %s1011_s21, %s1074_s23  ;;  %s75_s25 = sadd.s32 1, %s1007_s20 }
   0x7   : > { %p73_p0 = scmp.eq.s32.totalorder %s72_s24, 0  ;;  %p82_p1 = scmp.ne.s32.totalorder %s1007_s20, %s1003_s19 }
   0x8   : > { %p83_p2 = scmp.eq.s32.totalorder %s1011_s21, 0  ;;  %p88_p3 = scmp.ne.s32.totalorder %s1003_s19, %s999_s18 }
   0x9   : > { %s1084_s26 = scalar_select %p73_p0, %s1007_s20, %s75_s25  }
   0xa   : > { %p84_p4 = por %p83_p2, %p82_p1  ;;  %p89_p5 = scmp.eq.s32.totalorder %s1071_s22, 0 }
   0xb   : > { %p867_p6 = scmp.lt.s32.totalorder %s1011_s21, 3  ;;  %s1093_s28 = sand.u32 1, %s1007_s20  }
   0xc   : > { %p1088_p7 = por %p89_p5, %p88_p3  ;;  %s733_s29 = sshll.u32 %s1093_s28, 7 }
   0xd   : > { %s750_s30 = sshll.u32 %s1011_s21, 11  ;;  %s204_s9 = scalar_lea.vmem [#allocation3], %s733_s29 }
   0xe   : > { %s1329_s27 = scalar_select %p1088_p7, 1, 0 }
   0xf   : > { %s1102_s8 = scalar_lea.hbm %s1324_s2, %s750_s30  ;;  %s211_s10 = sshll.u32 %s204_s9, 4  ;;  %s1106_s10 = int_to_ptr.vmem [resolvable:$true] %s211_s10 }
  0x10   : > { %p1108_p8 = pnand %p867_p6, %p84_p4  ;;  %s201_s12 = scalar_lea.sflag [#allocation4], %s1093_s28 }
  0x11   : > { %s917_s13 = scalar_lea.hbm %s1102_s8, 2048  ;;  %s922_s16 = scalar_lea.hbm %s1324_s2, 6144 }
  0x12   : > { %p918_p10 = scmp.ne.s32.totalorder %s1102_s8, %s917_s13  ;;  %p919_p11 = pneg %p1108_p8 }
  0x13   : > { %p923_p0 = scmp.lt.s32.totalorder %s1102_s8, %s1324_s2  ;;  %p924_p1 = scmp.lt.s32.totalorder %s922_s16, %s917_s13 }
  0x14   : > { %p920_p12 = pnand %p919_p11, %p918_p10 }
  0x15   : > { %p925_p2 = por %p924_p1, %p923_p0 }
  0x16   : > { %p921_p13 = pneg %p920_p12 }
  0x18   : > { %p926_p3 = pnand %p925_p2, %p921_p13 }
  0x1a   : > { %929 = shalt.err (!%p926_p3)
}
  0x1b   : > { %s930_s24 = scalar_lea.vmem %s1106_s10, 2048  ;;  %s1013_s25 = smov [#allocation3]  }
  0x1c   : > { %p931_p4 = scmp.ne.s32.totalorder %s1106_s10, %s930_s24  ;;  %s935_s6 = sshll.u32 %s1013_s25, 4  ;;  %s936_s6 = int_to_ptr.vmem [resolvable:$false] %s935_s6 }
  0x1d   : > { %s937_s7 = scalar_lea.vmem %s936_s6, 4096  ;;  %p938_p10 = scmp.lt.s32.totalorder %s1106_s10, %s936_s6 }
  0x1e   : > { %p933_p5 = pnand %p931_p4, %p919_p11  ;;  %p939_p12 = scmp.lt.s32.totalorder %s937_s7, %s930_s24 }
  0x20   : > { %p934_p6 = pneg %p933_p5  ;;  %p940_p9 = por %p939_p12, %p938_p10 }
  0x22   : > { %p941_p0 = pnand %p940_p9, %p934_p6 }
  0x24   : > { %944 = shalt.err (!%p941_p0)
}
  0x25   : > { %s1014_s9 = smov 128   ;;  %s1015_s13 = smov 8  }
  0x26   : > { %863 = dma.hbm_to_vmem [thread:$0]  (!%p1108_p8), %s1102_s8, 2048, %s1106_s10, %s201_s12, %s1014_s9, %s1014_s9, %s1015_s13  }
  0x27   : > { %p247_p9 = scmp.lt.s32.totalorder %s1011_s21, 4  ;;  %s1149_s16 = scalar_lea.hbm %s1325_s3, %s750_s30 }
  0x28   : > { %p1331_p13 = scmp.ge.s32.totalorder %s1011_s21, 1  ;;  %s225_s18 = scalar_lea.vmem [#allocation5], %s733_s29 }
  0x29   : > { %s232_s24 = sshll.u32 %s225_s18, 4  ;;  %s222_s8 = scalar_lea.sflag [#allocation6], %s1093_s28  ;;  %s1159_s24 = int_to_ptr.vmem [resolvable:$true] %s232_s24 }
  0x2a   : > { %p1153_p1 = pnand %p1331_p13, %p247_p9  ;;  %s945_s10 = scalar_lea.hbm %s1149_s16, 2048 }
  0x2b   : > { %p946_p2 = scmp.ne.s32.totalorder %s1149_s16, %s945_s10  ;;  %s950_s12 = scalar_lea.hbm %s1325_s3, 6144 }
  0x2c   : > { %p951_p5 = scmp.lt.s32.totalorder %s1149_s16, %s1325_s3  ;;  %p952_p6 = scmp.lt.s32.totalorder %s950_s12, %s945_s10 }
  0x2d   : > { %p948_p3 = pnand %p946_p2, %p919_p11 }
  0x2e   : > { %p953_p10 = por %p952_p6, %p951_p5 }
  0x2f   : > { %p949_p4 = pneg %p948_p3 }
  0x31   : > { %p954_p12 = pnand %p953_p10, %p949_p4 }
  0x33   : > { %957 = shalt.err (!%p954_p12)
}
  0x34   : > { %s958_s28 = scalar_lea.vmem %s1159_s24, 2048  ;;  %s1016_s29 = smov [#allocation5]  }
  0x35   : > { %p959_p0 = scmp.ne.s32.totalorder %s1159_s24, %s958_s28  ;;  %s963_s7 = sshll.u32 %s1016_s29, 4  ;;  %s964_s7 = int_to_ptr.vmem [resolvable:$false] %s963_s7 }
  0x36   : > { %s965_s14 = scalar_lea.vmem %s964_s7, 4096  ;;  %p966_p2 = scmp.lt.s32.totalorder %s1159_s24, %s964_s7 }
  0x37   : > { %p961_p9 = pnand %p959_p0, %p919_p11  ;;  %p967_p3 = scmp.lt.s32.totalorder %s965_s14, %s958_s28 }
  0x39   : > { %p962_p13 = pneg %p961_p9  ;;  %p968_p7 = por %p967_p3, %p966_p2 }
  0x3b   : > { %p969_p5 = pnand %p968_p7, %p962_p13 }
  0x3d   : > { %972 = shalt.err (!%p969_p5)
}
  0x3e   : > { %866 = dma.hbm_to_vmem [thread:$0]  (!%p1108_p8), %s1149_s16, 2048, %s1159_s24, %s222_s8, %s1014_s9, %s1014_s9, %s1015_s13  }
  0x3f   : > { %251 = sbr.rel (%p1153_p1) target bundleno = 1103 (0x44f), region = 40  ;;  %s253_s15 = sand.u32 (!%p1153_p1), 1, %s1003_s19  }
  0x40   : > { %s740_s18 = sshll.u32 (!%p1153_p1), %s253_s15, 7  ;;  %s254_s10 = scalar_lea.sflag (!%p1153_p1), [#allocation4], %s253_s15 }
  0x41   : > { %s1190_s21 = scalar_lea.vmem (!%p1153_p1), [#allocation3], %s740_s18  ;;  %p1333_p7 = scmp.ne.s32.totalorder (!%p1153_p1), %s1329_s27, 0 }
  0x44   : > { %990 = dma.done.wait (%p1333_p7), %s254_s10, 2048  }
  0x45   : > { %992 = vsyncadd (%p1333_p7), %s254_s10, 4294965248  ;;  %s263_s11 = scalar_lea.sflag [#allocation6], %s253_s15  ;;  %s1196_s30 = scalar_lea.vmem [#allocation5], %s740_s18 }
  0x46   : > { %994 = dma.done.wait (%p1333_p7), %s263_s11, 2048  }
  0x47   : > { %996 = vsyncadd (%p1333_p7), %s263_s11, 4294965248  ;;  %p305_p8 = scmp.lt.s32.totalorder %s1071_s22, 2  ;;  %p745_p11 = scmp.ne.s32.totalorder %s1071_s22, 0 }
  0x49   : > { %s306_s9 = scalar_select %p305_p8, %s1071_s22, 2 }
  0x4a   : > { %320 = sbr.rel (%p745_p11) target bundleno = 81 (0x51), region = 52 }
  0x4b   : > { %s742_s13 = sshll.u32 %s306_s9, 3  ;;  %s743_s16 = sshll.u32 %s306_s9, 2 }
  0x4c   : > { %s1207_s8 = scalar_lea.vmem %s1323_s1, %s742_s13  ;;  %s1212_s6 = scalar_lea.vmem %s1326_s4, %s743_s16 }
  0x4d   : > { %s1217_s27 = scalar_lea.vmem %s1327_s5, %s742_s13 }
  0x4f   : > { %v321_v0 = vld [vmem:[%s1322_s0] sm:$0xff] }
  0x50   : > { %322 = vst [vmem:[#allocation2] sm:$0xff] %v321_v0 }
  0x51 PF: > { %v340_v1 = vld [vmem:[%s1190_s21 + $0x78] sm:$0xff]  ;;  %v1017_v3 = vmov 0.0   ;;  %v339_v4 = vld [vmem:[%s1190_s21 + $0x70] sm:$0xff]  ;;  %v338_v6 = vld [vmem:[%s1190_s21 + $0x68] sm:$0xff]  ;;  %vm1018_vm0 = vmmov 0   ;;  %s1019_s15 = smov 64   ;;  %v514_v46 = vlaneseq }
  0x52   : > { %v426_v2 = vld [vmem:[%s1196_s30 + $0x78] sm:$0xff]  ;;  %786 = vmatprep.subr.mxu0 %v1017_v3  ;;  %821 = vmatprep.subr.mxu1 %v1017_v3  ;;  %v425_v5 = vld [vmem:[%s1196_s30 + $0x70] sm:$0xff]  ;;  %v424_v7 = vld [vmem:[%s1196_s30 + $0x68] sm:$0xff]  ;;  %vm498_vm1 = vcmask 523264   ;;  %vm550_vm2 = vcmask 261120   ;;  %s1020_s18 = smov 96  }
  0x53   : > { %787 = vmatpush3.msra.mxu0 %v340_v1  ;;  %822 = vmatpush3.msra.mxu1 %v426_v2  ;;  %v337_v8 = vld [vmem:[%s1190_s21 + $0x60] sm:$0xff]  ;;  %v336_v10 = vld [vmem:[%s1190_s21 + $0x58] sm:$0xff]  ;;  %v335_v12 = vld [vmem:[%s1190_s21 + $0x50] sm:$0xff]  ;;  %v515_v47 = vshrl.u32 %v514_v46, 7  ;;  %s1021_s10 = smov 32  }
  0x54   : > { %788 = vmatprep.subr.mxu0 %v1017_v3  ;;  %823 = vmatprep.subr.mxu1 %v1017_v3  ;;  %v423_v9 = vld [vmem:[%s1196_s30 + $0x60] sm:$0xff]  ;;  %v422_v11 = vld [vmem:[%s1196_s30 + $0x58] sm:$0xff]  ;;  %v421_v13 = vld [vmem:[%s1196_s30 + $0x50] sm:$0xff] }
  0x55   : > { %789 = vmatpush3.msra.mxu0 %v339_v4  ;;  %824 = vmatpush3.msra.mxu1 %v425_v5  ;;  %v334_v14 = vld [vmem:[%s1190_s21 + $0x48] sm:$0xff]  ;;  %v333_v16 = vld [vmem:[%s1190_s21 + $0x40] sm:$0xff]  ;;  %v332_v18 = vld [vmem:[%s1190_s21 + $0x38] sm:$0xff]  ;;  %v516_v48 = vsub.s32 0, %v515_v47  ;;  %v521_v49 = vsub.s32 2, %v515_v47  ;;  %v531_v58 = vsub.s32 1, %v515_v47 }
  0x56   : > { %790 = vmatprep.subr.mxu0 %v1017_v3  ;;  %825 = vmatprep.subr.mxu1 %v1017_v3  ;;  %v420_v15 = vld [vmem:[%s1196_s30 + $0x48] sm:$0xff]  ;;  %v419_v17 = vld [vmem:[%s1196_s30 + $0x40] sm:$0xff]  ;;  %v418_v19 = vld [vmem:[%s1196_s30 + $0x38] sm:$0xff]  ;;  %v536_v59 = vsub.s32 3, %v515_v47 }
  0x57   : > { %791 = vmatpush3.msra.mxu0 %v338_v6  ;;  %826 = vmatpush3.msra.mxu1 %v424_v7  ;;  %v331_v20 = vld [vmem:[%s1190_s21 + $0x30] sm:$0xff]  ;;  %v330_v22 = vld [vmem:[%s1190_s21 + $0x28] sm:$0xff]  ;;  %v329_v24 = vld [vmem:[%s1190_s21 + $0x20] sm:$0xff] }
  0x58   : > { %792 = vmatprep.subr.mxu0 %v1017_v3  ;;  %827 = vmatprep.subr.mxu1 %v1017_v3  ;;  %v417_v21 = vld [vmem:[%s1196_s30 + $0x30] sm:$0xff]  ;;  %v416_v23 = vld [vmem:[%s1196_s30 + $0x28] sm:$0xff]  ;;  %v415_v25 = vld [vmem:[%s1196_s30 + $0x20] sm:$0xff] }
  0x59   : > { %793 = vmatpush3.msra.mxu0 %v337_v8  ;;  %828 = vmatpush3.msra.mxu1 %v423_v9  ;;  %v328_v26 = vld [vmem:[%s1190_s21 + $0x18] sm:$0xff]  ;;  %v327_v28 = vld [vmem:[%s1190_s21 + $0x10] sm:$0xff]  ;;  %v326_v30 = vld [vmem:[%s1190_s21 + $0x8] sm:$0xff] }
  0x5a   : > { %794 = vmatprep.subr.mxu0 %v1017_v3  ;;  %829 = vmatprep.subr.mxu1 %v1017_v3  ;;  %v414_v27 = vld [vmem:[%s1196_s30 + $0x18] sm:$0xff]  ;;  %v413_v29 = vld [vmem:[%s1196_s30 + $0x10] sm:$0xff]  ;;  %v412_v31 = vld [vmem:[%s1196_s30 + $0x8] sm:$0xff] }
  0x5b   : > { %795 = vmatpush3.msra.mxu0 %v336_v10  ;;  %830 = vmatpush3.msra.mxu1 %v422_v11  ;;  %v325_v32 = vld [vmem:[%s1190_s21] sm:$0xff]  ;;  %v323_v34 = vld [vmem:[#allocation2] sm:$0xff]  ;;  %s612_s21 = sadd.s32 1, %s1071_s22 }
  0x5c   : > { %796 = vmatprep.subr.mxu0 %v1017_v3  ;;  %831 = vmatprep.subr.mxu1 %v1017_v3  ;;  %v411_v33 = vld [vmem:[%s1196_s30] sm:$0xff]  ;;  %v1288_v35 = vld [vmem:[%s1207_s8] sm:$0xff]  ;;  %p747_p1 = scmp.ge.s32.totalorder %s612_s21, 3 }
  0x5d   : > { %797 = vmatpush3.msra.mxu0 %v335_v12  ;;  %832 = vmatpush3.msra.mxu1 %v421_v13  ;;  %v497_v50 = vld [vmem:[%s1212_s6] sm:$0xf] }
  0x5e   : > { %798 = vmatprep.subr.mxu0 %v1017_v3  ;;  %833 = vmatprep.subr.mxu1 %v1017_v3  ;;  %v517_v51 = vrot.slane %v497_v50, %v516_v48  ;;  %v522_v52 = vrot.slane %v497_v50, %v521_v49  ;;  %v532_v63 = vrot.slane %v497_v50, %v531_v58 }
  0x5f   : > { %799 = vmatpush3.msra.mxu0 %v334_v14  ;;  %834 = vmatpush3.msra.mxu1 %v420_v15 }
  0x60   : > { %800 = vmatprep.subr.mxu0 %v1017_v3  ;;  %835 = vmatprep.subr.mxu1 %v1017_v3 }
  0x61   : > { %801 = vmatpush3.msra.mxu0 %v333_v16  ;;  %836 = vmatpush3.msra.mxu1 %v419_v17 }
  0x62   : > { %802 = vmatprep.subr.mxu0 %v1017_v3  ;;  %837 = vmatprep.subr.mxu1 %v1017_v3 }
  0x63   : > { %803 = vmatpush3.msra.mxu0 %v332_v18  ;;  %838 = vmatpush3.msra.mxu1 %v418_v19 }
  0x64   : > { %804 = vmatprep.subr.mxu0 %v1017_v3  ;;  %839 = vmatprep.subr.mxu1 %v1017_v3 }
  0x65   : > { %805 = vmatpush3.msra.mxu0 %v331_v20  ;;  %840 = vmatpush3.msra.mxu1 %v417_v21 }
  0x66   : > { %806 = vmatprep.subr.mxu0 %v1017_v3  ;;  %841 = vmatprep.subr.mxu1 %v1017_v3 }
  0x67   : > { %807 = vmatpush3.msra.mxu0 %v330_v22  ;;  %842 = vmatpush3.msra.mxu1 %v416_v23 }
  0x68   : > { %808 = vmatprep.subr.mxu0 %v1017_v3  ;;  %843 = vmatprep.subr.mxu1 %v1017_v3 }
  0x69   : > { %809 = vmatpush3.msra.mxu0 %v329_v24  ;;  %844 = vmatpush3.msra.mxu1 %v415_v25 }
  0x6a   : > { %810 = vmatprep.subr.mxu0 %v1017_v3  ;;  %845 = vmatprep.subr.mxu1 %v1017_v3 }
  0x6b   : > { %811 = vmatpush3.msra.mxu0 %v328_v26  ;;  %846 = vmatpush3.msra.mxu1 %v414_v27 }
  0x6c   : > { %812 = vmatprep.subr.mxu0 %v1017_v3  ;;  %847 = vmatprep.subr.mxu1 %v1017_v3 }
  0x6d   : > { %813 = vmatpush3.msra.mxu0 %v327_v28  ;;  %848 = vmatpush3.msra.mxu1 %v413_v29 }
  0x6e   : > { %814 = vmatprep.subr.mxu0 %v1017_v3  ;;  %849 = vmatprep.subr.mxu1 %v1017_v3 }
  0x6f   : > { %815 = vmatpush3.msra.mxu0 %v326_v30  ;;  %850 = vmatpush3.msra.mxu1 %v412_v31 }
  0x70   : > { %816 = vmatprep.subr.mxu0 %v1017_v3  ;;  %851 = vmatprep.subr.mxu1 %v1017_v3 }
  0x71   : > { %817 = vmatpush3.msra.mxu0 %v325_v32  ;;  %818 = vmatprep.mubr.msk.f32.mxu0 %vm1018_vm0, %v1017_v3 }
  0x72   : > { %852 = vmatpush3.msra.mxu1 %v411_v33  ;;  %853 = vmatprep.mubr.msk.f32.mxu1 %vm1018_vm0, %v1017_v3  ;;  %v537_v3 = vrot.slane %v497_v50, %v536_v59 }
  0x73   : > { %819 = vmatmul.mubr.f32.vlgmr.msra.gmra.mxu0 %v323_v34  ;;  %854 = vmatmul.mubr.f32.vlgmr.msra.gmra.mxu1 %v1288_v35 }
 0x133   : > { %v407_v36 = vpop.f32.mrf.mxu0  ;;  %v493_v37 = vpop.f32.mrf.mxu1 }
 0x134   : > { %573 = vrot.lane.b32.xlu1 %v493_v37, %s1019_s15  ;;  %547 = vrot.lane.b32.xlu0 %v407_v36, %s1019_s15  ;;  %v499_v40 = vsel %vm498_vm1, %v407_v36, 0.0  ;;  %v524_v45 = vsel %vm498_vm1, %v493_v37, 0.0 }
 0x135   : > { %v820_v38 = vpop.f32.mrf.mxu0  ;;  %v855_v39 = vpop.f32.mrf.mxu1 }
 0x153   : > { %500 = vadd.xlane.f32.xlu0 %v499_v40 }
 0x1a6   : > { %v574_v41 = vpop.permute.xlu1 %573  ;;  %v548_v42 = vpop.permute.xlu0 %547 }
 0x1a7   : > { %v551_v43 = vsel %vm550_vm2, %v548_v42, 0.0  ;;  %v576_v44 = vsel %vm550_vm2, %v574_v41, 0.0 }
 0x1a8   : > { %552 = vadd.xlane.f32.xlu1 %v551_v43  ;;  %577 = vadd.xlane.f32.xlu0 %v576_v44 }
 0x1ac   : > { %525 = vadd.xlane.f32.xlu1 %v524_v45 }
 0x1dc   : > { %v501_v53 = vpop.xlane.xlu0 %500 }
 0x1dd   : > { %v503_v54 = vmul.f32 0.015625, %v501_v53 }
 0x1df   : > { %v504_v55 = vsub.f32 %v407_v36, %v503_v54 }
 0x1e1   : > { %v505_v56 = vmul.f32 %v504_v55, %v504_v55 }
 0x1e3   : > { %v506_v57 = vsel %vm498_vm1, %v505_v56, 0.0 }
 0x1e4   : > { %507 = vadd.xlane.f32.xlu0 %v506_v57 }
 0x231   : > { %v553_v60 = vpop.xlane.xlu1 %552  ;;  %v578_v61 = vpop.xlane.xlu0 %577 }
 0x232   : > { %v555_v62 = vmul.f32 0.03125, %v553_v60  ;;  %v579_v0 = vmul.f32 0.03125, %v578_v61 }
 0x234   : > { %v556_v1 = vsub.f32 %v407_v36, %v555_v62  ;;  %v580_v2 = vsub.f32 %v493_v37, %v579_v0 }
 0x235   : > { %v526_v4 = vpop.xlane.xlu1 %525 }
 0x236   : > { %v581_v5 = vmul.f32 %v580_v2, %v532_v63  ;;  %v527_v6 = vmul.f32 0.015625, %v526_v4  ;;  %v557_v7 = vmul.f32 %v556_v1, %v556_v1 }
 0x238   : > { %v528_v8 = vsub.f32 %v493_v37, %v527_v6  ;;  %559 = vrot.lane.b32.xlu0 %v557_v7, %s1019_s15  ;;  %v582_v9 = vadd.f32 %v581_v5, %v537_v3 }
 0x23a   : > { %v533_v10 = vmul.f32 %v532_v63, %v528_v8  ;;  %584 = vrot.lane.b32.xlu1 %v582_v9, %s1019_s15 }
 0x23c   : > { %v538_v11 = vadd.f32 %v537_v3, %v533_v10 }
 0x26d   : > { %v508_v12 = vpop.xlane.xlu0 %507 }
 0x26e   : > { %v510_v13 = vmul.f32 0.015873017, %v508_v12 }
 0x270   : > { %v511_v14 = vmax.f32 %v510_v13, 1e-12 }
 0x272   : > { %907 = vrsqrt.f32 %v511_v14 }
 0x27f   : > { %v908_v15 = vpop.eup %907 }
 0x280   : > { %v513_v16 = vmul.f32 %v908_v15, %v504_v55 }
 0x282   : > { %v518_v17 = vmul.f32 %v517_v51, %v513_v16 }
 0x284   : > { %v523_v18 = vadd.f32 %v522_v52, %v518_v17 }
 0x286   : > { %v539_v19 = vadd.f32 %v538_v11, %v523_v18 }
 0x288   : > { %v746_v20 = vmul.f32 -1.442695, %v539_v19 }
 0x28a   : > { %909 = vpow2.f32 %v746_v20 }
 0x297   : > { %v910_v21 = vpop.eup %909 }
 0x298   : > { %v543_v22 = vadd.f32 1.0, %v910_v21 }
 0x29a   : > { %911 = vrcp.f32 %v543_v22 }
 0x2a7   : > { %v912_v25 = vpop.eup %911 }
 0x2a8   : > { %v594_v40 = vsub.f32 1.0, %v912_v25 }
 0x2aa   : > { %v560_v23 = vpop.permute.xlu0 %559 }
 0x2ab   : > { %v562_v24 = vsel %vm550_vm2, %v560_v23, 0.0 }
 0x2ac   : > { %v585_v26 = vpop.permute.xlu1 %584  ;;  %563 = vadd.xlane.f32.xlu1 %v562_v24 }
 0x2ad   : > { %v587_v27 = vmul.f32 %v912_v25, %v585_v26 }
 0x2af   : > { %589 = vrot.lane.b32.xlu0 %v587_v27, %s1019_s15 }
 0x321   : > { %v590_v36 = vpop.permute.xlu0 %589 }
 0x335   : > { %v564_v28 = vpop.xlane.xlu1 %563 }
 0x336   : > { %v566_v29 = vmul.f32 0.032258064, %v564_v28 }
 0x338   : > { %v567_v30 = vmax.f32 %v566_v29, 1e-12 }
 0x33a   : > { %913 = vrsqrt.f32 %v567_v30 }
 0x347   : > { %v914_v31 = vpop.eup %913 }
 0x348   : > { %v569_v32 = vmul.f32 %v914_v31, %v556_v1 }
 0x34a   : > { %v570_v33 = vmul.f32 %v569_v32, %v517_v51 }
 0x34c   : > { %v571_v34 = vadd.f32 %v570_v33, %v522_v52 }
 0x34e   : > { %v592_v37 = vadd.f32 %v590_v36, %v571_v34 }
 0x350   : > { %915 = vtanh.f32 %v592_v37 }
 0x35d   : > { %v916_v38 = vpop.eup %915 }
 0x35e   : > { %596 = vrot.lane.b32.xlu0 %v916_v38, %s1020_s18 }
 0x362   : > { %601 = vrot.lane.b32.xlu0 %v1288_v35, %s1021_s10 }
 0x3d0   : > { %v597_v39 = vpop.permute.xlu0 %596 }
 0x3d1   : > { %v599_v42 = vmul.f32 %v597_v39, %v594_v40 }
 0x3d4   : > { %v602_v41 = vpop.permute.xlu0 %601 }
 0x3d5   : > { %v604_v43 = vmul.f32 %v912_v25, %v602_v41 }
 0x3d7   : > { %v605_v44 = vadd.f32 %v604_v43, %v599_v42 }
 0x3d9   : > { %607 = vrot.lane.b32.xlu0 %v605_v44, %s1020_s18 }
 0x449   : > { %616 = sbr.rel (%p747_p1) target bundleno = 1103 (0x44f), region = 56 }
 0x44b   : > { %v608_v45 = vpop.permute.xlu0 %607 }
 0x44c   : > { %v610_v46 = vsel %vm550_vm2, %v608_v45, 0.0 }
 0x44d   : > { %611 = vst [vmem:[%s1217_s27] sm:$0xff] %v610_v46 }
 0x44e   : > { %617 = vst [vmem:[#allocation2] sm:$0xff] %v610_v46 }
 0x44f PF: > { %p18_p4 = scmp.ge.s32.totalorder %s1074_s23, 5   ;;  %s1334_s18 = smov %s1003_s19 }
 0x450   : > { %s1335_s19 = smov %s1007_s20  ;;  %s1336_s20 = smov %s1084_s26 }
 0x451   : > { %s1337_s21 = smov %s1074_s23  ;;  %20 = sbr.rel (!%p18_p4) target bundleno = 5 (0x5), region = 107 }
 0x456   :  { %637 = vsyncpa [#allocation4], 1 }
 0x457   :  { %639 = vsyncpa [#allocation4 + $0x1], 1 }
 0x458   :  { %640 = vsyncpa [#allocation6], 1 }
 0x459   :  { %642 = vsyncpa [#allocation6 + $0x1], 1 }

</bundles_post_ra>
